<compile_context>
chip_gen: v7x
topology: tpu7x:2x2x1
jax: 0.10.0
libtpu: 0.0.40
codegen_flags: <defaults>
</compile_context>

<pallas_src>
import functools

import jax
import jax.numpy as jnp
from jax import lax
from jax.experimental import pallas as pl
from jax.experimental.pallas import tpu as pltpu

MARGIN = 0.3
EPS = 1e-12
INV_EPS = 1.0 / EPS   # x / max(||x||, eps) == x * min(1/||x||, 1/eps)


def _triplet_kernel(im_r_ref, rec_r_ref, im_t_ref, rec_t_ref, out_ref,
                    *, b_true, tm, tn, margin, need_mask, mxu_dtype):
    j = pl.program_id(1)

    @pl.when(j == 0)
    def _init():
        out_ref[...] = jnp.zeros_like(out_ref)

    # ---- row side: (TM, D) blocks, normalize along D, row diagonal ----
    im_r = im_r_ref[...].astype(jnp.float32)
    rec_r = rec_r_ref[...].astype(jnp.float32)
    im_r_inv = jnp.minimum(lax.rsqrt(jnp.sum(im_r * im_r, axis=-1, keepdims=True)), INV_EPS)
    rec_r_inv = jnp.minimum(lax.rsqrt(jnp.sum(rec_r * rec_r, axis=-1, keepdims=True)), INV_EPS)
    im_rn = im_r * im_r_inv                       # (TM, D)
    rec_rn = rec_r * rec_r_inv                    # (TM, D)
    # S[r, r] for the rows of this tile (row-wise dot; no eye mask).
    diag_row = 1.0 - jnp.sum(im_rn * rec_rn, axis=-1, keepdims=True)     # (TM, 1)

    # ---- column side: transposed (D, TN) blocks, normalize along D (axis 0) ----
    im_t = im_t_ref[...].astype(jnp.float32)      # (D, TN)
    rec_t = rec_t_ref[...].astype(jnp.float32)    # (D, TN)
    im_t_inv = jnp.minimum(lax.rsqrt(jnp.sum(im_t * im_t, axis=0, keepdims=True)), INV_EPS)
    rec_t_inv = jnp.minimum(lax.rsqrt(jnp.sum(rec_t * rec_t, axis=0, keepdims=True)), INV_EPS)
    im_tn = im_t * im_t_inv                       # (D, TN)
    rec_tn = rec_t * rec_t_inv                    # (D, TN)
    # S[c, c] for the columns of this tile, already laid out as (1, TN).
    diag_col = 1.0 - jnp.sum(im_tn * rec_tn, axis=0, keepdims=True)      # (1, TN)

    # ---- MXU: (TM, D) @ (D, TN) — contraction on D, no transposed operands ----
    sim = lax.dot_general(
        im_rn.astype(mxu_dtype), rec_tn.astype(mxu_dtype),
        dimension_numbers=(((1,), (0,)), ((), ())),
        preferred_element_type=jnp.float32,
    )
    scores = 1.0 - sim                            # (TM, TN)

    # MarginRankingLoss(x1=scores, x2=diag, y=1, reduction='none'):
    #   max(0, margin + diag - scores)
    cost = (jnp.maximum(0.0, margin + diag_row - scores)
            + jnp.maximum(0.0, margin + diag_col - scores))

    if need_mask:  # only emitted when B was padded up to the tile size
        i = pl.program_id(0)
        row_ok = (i * tm + lax.broadcasted_iota(jnp.int32, (tm, 1), 0)) < b_true
        col_ok = (j * tn + lax.broadcasted_iota(jnp.int32, (1, tn), 1)) < b_true
        cost = jnp.where(row_ok & col_ok, cost, 0.0)

    # Per-row partial sums; the tiny (B,1) -> scalar reduction happens outside.
    out_ref[...] += jnp.sum(cost, axis=1, keepdims=True)


def triplet_loss(im: jax.Array, rec: jax.Array, *, margin: float = MARGIN,
                 block: int = 256, use_bf16_matmul: bool = False) -> jax.Array:
    """im, rec: (B, D) embeddings -> scalar float32 triplet loss."""
    assert im.shape == rec.shape and im.ndim == 2
    B, D = im.shape

    # Tile size: MXU/lane-native multiple of 128 once B is large; otherwise a
    # single sublane-aligned tile covering the whole (padded) batch.
    if B >= block:
        T = block                      # multiple of 128 (and of 8)
    else:
        T = -(-B // 8) * 8             # round batch up to a multiple of 8
    B_pad = -(-B // T) * T
    need_mask = B_pad != B

    if need_mask:
        pad = ((0, B_pad - B), (0, 0))
        im_p = jnp.pad(im, pad)
        rec_p = jnp.pad(rec, pad)
    else:
        im_p, rec_p = im, rec

    # Layout plumbing only (done by XLA outside the kernel): transposed copies so
    # the MXU sees (T, D) @ (D, T) and the column diagonal is produced as (1, T).
    im_t = im_p.T                      # (D, B_pad)
    rec_t = rec_p.T                    # (D, B_pad)

    n = B_pad // T
    # On v6e/v7x, bf16 MXU operands halve DMA bytes / double MXU rate; keep f32
    # accumulation. Left off by default (and for v5e) to match f32 reference.
    mxu_dtype = jnp.bfloat16 if use_bf16_matmul else jnp.float32

    kernel = functools.partial(
        _triplet_kernel, b_true=B, tm=T, tn=T, margin=float(margin),
        need_mask=need_mask, mxu_dtype=mxu_dtype)

    partials = pl.pallas_call(
        kernel,
        out_shape=jax.ShapeDtypeStruct((B_pad, 1), jnp.float32),
        grid_spec=pltpu.PrefetchScalarGridSpec(
            num_scalar_prefetch=0,
            grid=(n, n),
            in_specs=[
                pl.BlockSpec((T, D), lambda i, j: (i, 0)),   # im rows   (lhs + row diag)
                pl.BlockSpec((T, D), lambda i, j: (i, 0)),   # rec rows  (row diag)
                pl.BlockSpec((D, T), lambda i, j: (0, j)),   # im^T cols (col diag)
                pl.BlockSpec((D, T), lambda i, j: (0, j)),   # rec^T cols (MXU rhs + col diag)
            ],
            out_specs=pl.BlockSpec((T, 1), lambda i, j: (i, 0)),
        ),
        compiler_params=pltpu.CompilerParams(
            # Row tiles are independent -> shard across v7x's 2 TensorCores
            # (no effect on v5e/v6e). Column axis accumulates into the resident
            # output block -> "arbitrary", kept last.
            dimension_semantics=("parallel", "arbitrary"),
            # Explicit scoped-VMEM limit: safe on 64 MiB (v7x) and 128 MiB
            # (v5e/v6e) parts; T=256 tiles stay far below it anyway.
            vmem_limit_bytes=48 * 1024 * 1024,
        ),
    )(im_p, rec_p, im_t, rec_t)

    # Each true diagonal entry of (cost_im + cost_rec) is exactly 2*margin:
    # subtract the closed-form correction instead of masking in the kernel.
    total = jnp.sum(partials) - 2.0 * float(margin) * B
    # Matches the PyTorch module: sum / (B - 1).  (B == 1 is undefined there too.)
    return total / (B - 1)


def _triplet_loss_ref(im, rec, margin=MARGIN):
    """Pure-JAX reference (faithful to F.normalize + MarginRankingLoss)."""
    def norm(x):
        return x / jnp.maximum(jnp.linalg.norm(x, axis=-1, keepdims=True), EPS)
    scores = 1.0 - norm(im) @ norm(rec).T
    B = im.shape[0]
    diag = jnp.diag(scores)
    cost_im = jnp.maximum(0.0, margin + diag[:, None] - scores)
    cost_rec = jnp.maximum(0.0, margin + diag[None, :] - scores)
    mask = ~jnp.eye(B, dtype=bool)
    return jnp.sum((cost_im + cost_rec) * mask) / (B - 1)


if __name__ == "__main__":
    key = jax.random.PRNGKey(0)
    k1, k2, k3, k4 = jax.random.split(key, 4)

    # Small shape implied by the module's forward: a batch of (im, rec) embeddings.
    B, D = 8, 32
    im = jax.random.normal(k1, (B, D), dtype=jnp.float32)
    rec = jax.random.normal(k2, (B, D), dtype=jnp.float32)
    out = jax.block_until_ready(triplet_loss(im, rec))
    ref = _triplet_loss_ref(im, rec)
    assert jnp.allclose(out, ref, rtol=2e-4, atol=1e-4), (out, ref)

    # Also exercise the tiled + padded/masked path (B not a multiple of the tile).
    B2, D2 = 300, 32
    im2 = jax.random.normal(k3, (B2, D2), dtype=jnp.float32)
    rec2 = jax.random.normal(k4, (B2, D2), dtype=jnp.float32)
    out2 = jax.block_until_ready(triplet_loss(im2, rec2))
    ref2 = _triplet_loss_ref(im2, rec2)
    assert jnp.allclose(out2, ref2, rtol=2e-4, atol=1e-4), (out2, ref2)

    print("KERNEL_OK")
</pallas_src>

<mosaic_0001>
module attributes {stable_mosaic.version = 11 : i64} {
  func.func @_triplet_kernel(%arg0: i32, %arg1: i32, %arg2: memref<8x32xf32, #tpu.memory_space<vmem>>, %arg3: memref<8x32xf32, #tpu.memory_space<vmem>>, %arg4: memref<32x8xf32, #tpu.memory_space<vmem>>, %arg5: memref<32x8xf32, #tpu.memory_space<vmem>>, %arg6: memref<8x1xf32, #tpu.memory_space<vmem>>) attributes {dimension_semantics = [#tpu.dimension_semantics<parallel>, #tpu.dimension_semantics<arbitrary>], iteration_bounds = array<i64: 1, 1>, scalar_prefetch = 0 : i64, scratch_operands = 0 : i64, tpu.core_type = #tpu.core_type<tc>, window_params = [{transform_indices = @transform_0, window_bounds = array<i64: 8, 32>}, {transform_indices = @transform_1, window_bounds = array<i64: 8, 32>}, {transform_indices = @transform_2, window_bounds = array<i64: 32, 8>}, {transform_indices = @transform_3, window_bounds = array<i64: 32, 8>}, {transform_indices = @transform_4, window_bounds = array<i64: 8, 1>}]} {
    %c0_i32 = arith.constant 0 : i32
    %0 = arith.cmpi eq, %arg1, %c0_i32 : i32
    %1 = arith.extui %0 : i1 to i32
    %c0_i32_0 = arith.constant 0 : i32
    %2 = arith.cmpi ne, %1, %c0_i32_0 : i32
    scf.if %2 {
      %cst_30 = arith.constant 0.000000e+00 : f32
      %70 = vector.broadcast %cst_30 : f32 to vector<8x1xf32>
      %c0_31 = arith.constant 0 : index
      %c0_32 = arith.constant 0 : index
      %71 = vector.load %arg6[%c0_31, %c0_32] : memref<8x1xf32, #tpu.memory_space<vmem>>, vector<8x1xf32>
      tpu.vector_store %arg6[%c0_31, %c0_32], %70 {strides = array<i32>} : memref<8x1xf32, #tpu.memory_space<vmem>>, vector<8x1xf32>,
    } else {
    }
    %c0 = arith.constant 0 : index
    %c0_1 = arith.constant 0 : index
    %3 = vector.load %arg2[%c0, %c0_1] : memref<8x32xf32, #tpu.memory_space<vmem>>, vector<8x32xf32>
    %c0_2 = arith.constant 0 : index
    %c0_3 = arith.constant 0 : index
    %4 = vector.load %arg3[%c0_2, %c0_3] : memref<8x32xf32, #tpu.memory_space<vmem>>, vector<8x32xf32>
    %5 = arith.mulf %3, %3 : vector<8x32xf32>
    %cst = arith.constant dense<0.000000e+00> : vector<8xf32>
    %6 = vector.multi_reduction <add>, %5, %cst [1] : vector<8x32xf32> to vector<8xf32>
    %7 = vector.shape_cast %6 : vector<8xf32> to vector<8x1xf32>
    %8 = math.rsqrt %7 : vector<8x1xf32>
    %cst_4 = arith.constant 9.99999995E+11 : f32
    %9 = vector.broadcast %cst_4 : f32 to vector<8x1xf32>
    %10 = arith.minimumf %8, %9 : vector<8x1xf32>
    %11 = arith.mulf %4, %4 : vector<8x32xf32>
    %cst_5 = arith.constant dense<0.000000e+00> : vector<8xf32>
    %12 = vector.multi_reduction <add>, %11, %cst_5 [1] : vector<8x32xf32> to vector<8xf32>
    %13 = vector.shape_cast %12 : vector<8xf32> to vector<8x1xf32>
    %14 = math.rsqrt %13 : vector<8x1xf32>
    %cst_6 = arith.constant 9.99999995E+11 : f32
    %15 = vector.broadcast %cst_6 : f32 to vector<8x1xf32>
    %16 = arith.minimumf %14, %15 : vector<8x1xf32>
    %17 = vector.broadcast %10 : vector<8x1xf32> to vector<8x32xf32>
    %18 = arith.mulf %3, %17 : vector<8x32xf32>
    %19 = vector.broadcast %16 : vector<8x1xf32> to vector<8x32xf32>
    %20 = arith.mulf %4, %19 : vector<8x32xf32>
    %21 = arith.mulf %18, %20 : vector<8x32xf32>
    %cst_7 = arith.constant dense<0.000000e+00> : vector<8xf32>
    %22 = vector.multi_reduction <add>, %21, %cst_7 [1] : vector<8x32xf32> to vector<8xf32>
    %23 = vector.shape_cast %22 : vector<8xf32> to vector<8x1xf32>
    %cst_8 = arith.constant 1.000000e+00 : f32
    %24 = vector.broadcast %cst_8 : f32 to vector<8x1xf32>
    %25 = arith.subf %24, %23 : vector<8x1xf32>
    %c0_9 = arith.constant 0 : index
    %c0_10 = arith.constant 0 : index
    %26 = vector.load %arg4[%c0_9, %c0_10] : memref<32x8xf32, #tpu.memory_space<vmem>>, vector<32x8xf32>
    %c0_11 = arith.constant 0 : index
    %c0_12 = arith.constant 0 : index
    %27 = vector.load %arg5[%c0_11, %c0_12] : memref<32x8xf32, #tpu.memory_space<vmem>>, vector<32x8xf32>
    %28 = arith.mulf %26, %26 : vector<32x8xf32>
    %cst_13 = arith.constant dense<0.000000e+00> : vector<8xf32>
    %29 = vector.multi_reduction <add>, %28, %cst_13 [0] : vector<32x8xf32> to vector<8xf32>
    %30 = vector.shape_cast %29 : vector<8xf32> to vector<1x8xf32>
    %31 = math.rsqrt %30 : vector<1x8xf32>
    %cst_14 = arith.constant 9.99999995E+11 : f32
    %32 = vector.broadcast %cst_14 : f32 to vector<1x8xf32>
    %33 = arith.minimumf %31, %32 : vector<1x8xf32>
    %34 = arith.mulf %27, %27 : vector<32x8xf32>
    %cst_15 = arith.constant dense<0.000000e+00> : vector<8xf32>
    %35 = vector.multi_reduction <add>, %34, %cst_15 [0] : vector<32x8xf32> to vector<8xf32>
    %36 = vector.shape_cast %35 : vector<8xf32> to vector<1x8xf32>
    %37 = math.rsqrt %36 : vector<1x8xf32>
    %cst_16 = arith.constant 9.99999995E+11 : f32
    %38 = vector.broadcast %cst_16 : f32 to vector<1x8xf32>
    %39 = arith.minimumf %37, %38 : vector<1x8xf32>
    %40 = vector.broadcast %33 : vector<1x8xf32> to vector<32x8xf32>
    %41 = arith.mulf %26, %40 : vector<32x8xf32>
    %42 = vector.broadcast %39 : vector<1x8xf32> to vector<32x8xf32>
    %43 = arith.mulf %27, %42 : vector<32x8xf32>
    %44 = arith.mulf %41, %43 : vector<32x8xf32>
    %cst_17 = arith.constant dense<0.000000e+00> : vector<8xf32>
    %45 = vector.multi_reduction <add>, %44, %cst_17 [0] : vector<32x8xf32> to vector<8xf32>
    %46 = vector.shape_cast %45 : vector<8xf32> to vector<1x8xf32>
    %cst_18 = arith.constant 1.000000e+00 : f32
    %47 = vector.broadcast %cst_18 : f32 to vector<1x8xf32>
    %48 = arith.subf %47, %46 : vector<1x8xf32>
    %cst_19 = arith.constant dense<0.000000e+00> : vector<8x8xf32>
    %49 = tpu.matmul %18, %43, %cst_19 {dimension_numbers = #tpu.dot_dimension_numbers<[1], [0], [0], [1], [0, 0, 1, 1], [], []>} : vector<8x32xf32>, vector<32x8xf32>, vector<8x8xf32> -> vector<8x8xf32>
    %cst_20 = arith.constant 1.000000e+00 : f32
    %50 = vector.broadcast %cst_20 : f32 to vector<8x8xf32>
    %51 = arith.subf %50, %49 : vector<8x8xf32>
    %cst_21 = arith.constant 3.000000e-01 : f32
    %52 = vector.broadcast %cst_21 : f32 to vector<8x1xf32>
    %53 = arith.addf %52, %25 : vector<8x1xf32>
    %54 = vector.broadcast %53 : vector<8x1xf32> to vector<8x8xf32>
    %55 = arith.subf %54, %51 : vector<8x8xf32>
    %cst_22 = arith.constant 0.000000e+00 : f32
    %56 = vector.broadcast %cst_22 : f32 to vector<8x8xf32>
    %57 = arith.maximumf %56, %55 : vector<8x8xf32>
    %cst_23 = arith.constant 3.000000e-01 : f32
    %58 = vector.broadcast %cst_23 : f32 to vector<1x8xf32>
    %59 = arith.addf %58, %48 : vector<1x8xf32>
    %60 = vector.broadcast %59 : vector<1x8xf32> to vector<8x8xf32>
    %61 = arith.subf %60, %51 : vector<8x8xf32>
    %cst_24 = arith.constant 0.000000e+00 : f32
    %62 = vector.broadcast %cst_24 : f32 to vector<8x8xf32>
    %63 = arith.maximumf %62, %61 : vector<8x8xf32>
    %64 = arith.addf %57, %63 : vector<8x8xf32>
    %c0_25 = arith.constant 0 : index
    %c0_26 = arith.constant 0 : index
    %65 = vector.load %arg6[%c0_25, %c0_26] : memref<8x1xf32, #tpu.memory_space<vmem>>, vector<8x1xf32>
    %cst_27 = arith.constant dense<0.000000e+00> : vector<8xf32>
    %66 = vector.multi_reduction <add>, %64, %cst_27 [1] : vector<8x8xf32> to vector<8xf32>
    %67 = vector.shape_cast %66 : vector<8xf32> to vector<8x1xf32>
    %68 = arith.addf %65, %67 : vector<8x1xf32>
    %c0_28 = arith.constant 0 : index
    %c0_29 = arith.constant 0 : index
    %69 = vector.load %arg6[%c0_28, %c0_29] : memref<8x1xf32, #tpu.memory_space<vmem>>, vector<8x1xf32>
    tpu.vector_store %arg6[%c0_28, %c0_29], %68 {strides = array<i32>} : memref<8x1xf32, #tpu.memory_space<vmem>>, vector<8x1xf32>,
    return
  }
  func.func @transform_0(%arg0: i32, %arg1: i32) -> (i32, i32) {
    %c0_i32 = arith.constant 0 : i32
    %c0_i32_0 = arith.constant 0 : i32
    return %arg0, %c0_i32 : i32, i32
  }
  func.func @transform_1(%arg0: i32, %arg1: i32) -> (i32, i32) {
    %c0_i32 = arith.constant 0 : i32
    %c0_i32_0 = arith.constant 0 : i32
    return %arg0, %c0_i32 : i32, i32
  }
  func.func @transform_2(%arg0: i32, %arg1: i32) -> (i32, i32) {
    %c0_i32 = arith.constant 0 : i32
    %c0_i32_0 = arith.constant 0 : i32
    return %c0_i32, %arg1 : i32, i32
  }
  func.func @transform_3(%arg0: i32, %arg1: i32) -> (i32, i32) {
    %c0_i32 = arith.constant 0 : i32
    %c0_i32_0 = arith.constant 0 : i32
    return %c0_i32, %arg1 : i32, i32
  }
  func.func @transform_4(%arg0: i32, %arg1: i32) -> (i32, i32) {
    %c0_i32 = arith.constant 0 : i32
    %c0_i32_0 = arith.constant 0 : i32
    return %arg0, %c0_i32 : i32, i32
  }
}

</mosaic_0001>

<bundles_post_ra>
// kernel: tpu_custom_call.1
= control target key start
LH: loop header
LB: loop body
LE: loop exit
PB: predicated region body
PF: predicated region fallthrough
CT: control target
= control target key end

     0   :  { %vm26_vm0 = vcmask 261120   ;;  %vm57_vm1 = vcmask 64512   ;;  %v244_v27 = vmov 0.0|0.0   ;;  %vm245_vm2 = vmmov 0   ;;  %s340_s0 = inlined_call_operand.vmem [shape: f32[8,32], index: 0, kind: input, shape index: {}]   ;;  %s341_s1 = inlined_call_operand.vmem [shape: f32[8,32], index: 1, kind: input, shape index: {}]   ;;  %s342_s3 = inlined_call_operand.vmem [shape: f32[32,8], index: 3, kind: input, shape index: {}]   ;;  %s343_s2 = inlined_call_operand.vmem [shape: f32[32,8], index: 2, kind: input, shape index: {}]   ;;  %s344_s4 = inlined_call_operand.vmem [shape: f32[8,1], index: 4, kind: output, shape index: {}]  }
   0x1   :  { %v275_v0 = vld [vmem:[%s340_s0] sm:$0xff]  ;;  %v50_v5 = vld [vmem:[%s342_s3 + $0x8] sm:$0xff]  ;;  %v51_v6 = vld [vmem:[%s342_s3 + $0x10] sm:$0xff]  ;;  %227 = vmatprep.subr.bf16.mxu0 %v244_v27  ;;  %v246_v28 = vmov 0.0   ;;  %vm21_vm3 = vcmask 7168  }
   0x2   :  { %v280_v1 = vld [vmem:[%s341_s1] sm:$0xff]  ;;  %v25_v3 = vmul.f32 %v275_v0, %v275_v0  ;;  %v52_v7 = vld [vmem:[%s342_s3 + $0x18] sm:$0xff]  ;;  %v74_v9 = vmul.f32 %v50_v5, %v50_v5  ;;  %v75_v10 = vmul.f32 %v51_v6, %v51_v6  ;;  %224 = vmatprep.mubr.msk.f32.mxu0 %vm245_vm2, %v246_v28  ;;  %v46_v31 = vld [vmem:[%s343_s2 + $0x8] sm:$0xff]  ;;  %22 = vst.msk [vmem:[%s344_s4] sm:$0xff] %vm21_vm3, %v246_v28 }
   0x3   :  { %v49_v2 = vld [vmem:[%s342_s3] sm:$0xff]  ;;  %v32_v4 = vmul.f32 %v280_v1, %v280_v1  ;;  %v76_v11 = vmul.f32 %v52_v7, %v52_v7  ;;  %v47_v32 = vld [vmem:[%s343_s2 + $0x10] sm:$0xff]  ;;  %v48_v34 = vld [vmem:[%s343_s2 + $0x18] sm:$0xff]  ;;  %v54_v36 = vmul.f32 %v46_v31, %v46_v31 }
   0x4   :  { %v73_v8 = vmul.f32 %v49_v2, %v49_v2  ;;  %v27_v12 = vsel %vm26_vm0, %v25_v3, 0.0  ;;  %v78_v14 = vsel %vm57_vm1, %v74_v9, 0.0  ;;  %v80_v15 = vsel %vm57_vm1, %v75_v10, 0.0  ;;  %v45_v30 = vld [vmem:[%s343_s2] sm:$0xff] }
   0x5   :  { %28 = vadd.xlane.f32.xlu0 %v27_v12  ;;  %v33_v16 = vsel %vm26_vm0, %v32_v4, 0.0  ;;  %v82_v18 = vsel %vm57_vm1, %v76_v11, 0.0  ;;  %v53_v35 = vmul.f32 %v45_v30, %v45_v30  ;;  %v55_v37 = vmul.f32 %v47_v32, %v47_v32 }
   0x6   :  { %v77_v13 = vsel %vm57_vm1, %v73_v8, 0.0  ;;  %v56_v38 = vmul.f32 %v48_v34, %v48_v34  ;;  %v59_v43 = vsel %vm57_vm1, %v54_v36, 0.0 }
   0x7   :  { %v79_v17 = vadd.f32 %v78_v14, %v77_v13  ;;  %v58_v42 = vsel %vm57_vm1, %v53_v35, 0.0  ;;  %v61_v44 = vsel %vm57_vm1, %v55_v37, 0.0 }
   0x8   :  { %v60_v46 = vadd.f32 %v59_v43, %v58_v42  ;;  %v63_v48 = vsel %vm57_vm1, %v56_v38, 0.0 }
   0x9   :  { %v81_v19 = vadd.f32 %v80_v15, %v79_v17  ;;  %34 = vadd.xlane.f32.xlu0 %v33_v16 }
   0xa   :  { %v62_v49 = vadd.f32 %v61_v44, %v60_v46 }
   0xb   :  { %v83_v20 = vadd.f32 %v82_v18, %v81_v19 }
   0xc   :  { %v64_v51 = vadd.f32 %v63_v48, %v62_v49 }
   0xd   :  { %v84_v21 = vrot.slane %v83_v20, 4 }
   0xe   :  { %v65_v52 = vrot.slane %v64_v51, 4 }
   0xf   :  { %v85_v22 = vadd.f32 %v84_v21, %v83_v20 }
  0x10   :  { %v66_v53 = vadd.f32 %v65_v52, %v64_v51 }
  0x11   :  { %v86_v23 = vrot.slane %v85_v22, 2 }
  0x12   :  { %v67_v54 = vrot.slane %v66_v53, 2 }
  0x13   :  { %v87_v24 = vadd.f32 %v86_v23, %v85_v22 }
  0x14   :  { %v68_v55 = vadd.f32 %v67_v54, %v66_v53 }
  0x15   :  { %v88_v25 = vrot.slane %v87_v24, 1 }
  0x16   :  { %v69_v56 = vrot.slane %v68_v55, 1 }
  0x17   :  { %v89_v26 = vadd.f32 %v88_v25, %v87_v24 }
  0x18   :  { %v70_v57 = vadd.f32 %v69_v56, %v68_v55 }
  0x19   :  { %236 = vrsqrt.f32 %v89_v26 }
  0x1a   :  { %238 = vrsqrt.f32 %v70_v57 }
  0x23   :  { %v237_v29 = vpop.eup %236 }
  0x24   :  { %v91_v33 = vmin.f32 %v237_v29, 1e+12  ;;  %v239_v58 = vpop.eup %238 }
  0x25   :  { %v72_v59 = vmin.f32 %v239_v58, 1e+12 }
  0x26   :  { %v96_v39 = vmul.f32 %v91_v33, %v49_v2  ;;  %v97_v40 = vmul.f32 %v91_v33, %v50_v5  ;;  %v98_v41 = vmul.f32 %v91_v33, %v51_v6  ;;  %v99_v45 = vmul.f32 %v91_v33, %v52_v7 }
  0x27   :  { %v92_v60 = vmul.f32 %v72_v59, %v45_v30  ;;  %v93_v61 = vmul.f32 %v72_v59, %v46_v31  ;;  %v94_v62 = vmul.f32 %v72_v59, %v47_v32  ;;  %v95_v63 = vmul.f32 %v72_v59, %v48_v34 }
  0x28   :  { %v228_v47 = vpack.c.bf16 %v97_v40, %v96_v39  ;;  %v231_v50 = vpack.c.bf16 %v99_v45, %v98_v41 }
  0x29   :  { %v100_v2 = vmul.f32 %v96_v39, %v92_v60  ;;  %v101_v3 = vmul.f32 %v97_v40, %v93_v61  ;;  %v102_v4 = vmul.f32 %v98_v41, %v94_v62  ;;  %v103_v5 = vmul.f32 %v99_v45, %v95_v63  ;;  %v199_v41 = vld [vmem:[%s344_s4] sm:$0xff] }
  0x2a   :  { %229 = vmatpush3.bf16.msra.mxu0 %v228_v47 }
  0x2b   :  { %230 = vmatprep.subr.bf16.mxu0 %v244_v27  ;;  %v104_v6 = vsel %vm57_vm1, %v100_v2, 0.0  ;;  %v105_v7 = vsel %vm57_vm1, %v101_v3, 0.0  ;;  %v107_v8 = vsel %vm57_vm1, %v102_v4, 0.0  ;;  %v109_v10 = vsel %vm57_vm1, %v103_v5, 0.0 }
  0x2c   :  { %v106_v9 = vadd.f32 %v105_v7, %v104_v6 }
  0x2e   :  { %232 = vmatpush3.bf16.msra.mxu0 %v231_v50  ;;  %v108_v11 = vadd.f32 %v107_v8, %v106_v9 }
  0x30   :  { %v110_v12 = vadd.f32 %v109_v10, %v108_v11 }
  0x32   :  { %v111_v23 = vrot.slane %v110_v12, 4 }
  0x34   :  { %v112_v24 = vadd.f32 %v111_v23, %v110_v12 }
  0x36   :  { %v113_v25 = vrot.slane %v112_v24, 2 }
  0x38   :  { %v114_v26 = vadd.f32 %v113_v25, %v112_v24 }
  0x3a   :  { %v115_v27 = vrot.slane %v114_v26, 1 }
  0x3c   :  { %v116_v28 = vadd.f32 %v115_v27, %v114_v26 }
  0x3e   :  { %v117_v30 = vsub.f32 1.0, %v116_v28 }
  0x92   :  { %v29_v13 = vpop.xlane.xlu0 %28 }
  0x93   :  { %240 = vrsqrt.f32 %v29_v13 }
  0x96   :  { %v35_v14 = vpop.xlane.xlu0 %34 }
  0x97   :  { %242 = vrsqrt.f32 %v35_v14 }
  0x9d   :  { %v241_v15 = vpop.eup %240 }
  0x9e   :  { %v31_v16 = vmin.f32 %v241_v15, 1e+12 }
  0xa0   :  { %v38_v17 = vmul.f32 %v31_v16, %v275_v0  ;;  %v195_v0 = vadd.f32 0.3, %v117_v30 }
  0xa1   :  { %v243_v18 = vpop.eup %242 }
  0xa2   :  { %v37_v19 = vmin.f32 %v243_v18, 1e+12  ;;  %225 = vmatmul.mubr.msk.f32.vlgmr.msra.gmra.mrb[0].mxu0 %vm26_vm0, %v38_v17 }
  0xa4   :  { %v39_v20 = vmul.f32 %v37_v19, %v280_v1 }
  0xa6   :  { %v40_v21 = vmul.f32 %v39_v20, %v38_v17 }
  0xa8   :  { %v41_v22 = vsel %vm26_vm0, %v40_v21, 0.0 }
  0xa9   :  { %42 = vadd.xlane.f32.xlu1 %v41_v22 }
 0x136   :  { %v43_v29 = vpop.xlane.xlu1 %42 }
 0x137   :  { %v44_v31 = vsub.f32 1.0, %v43_v29 }
 0x139   :  { %v192_v33 = vadd.f32 0.3, %v44_v31 }
 0x175   :  { %v187_v32 = vpop.f32.mrb[0].mxu0 }
 0x176   :  { %v191_v34 = vsub.f32 1.0, %v187_v32  ;;  %v226_v35 = vpop.f32.mrb[1].mxu0 }
 0x178   :  { %v193_v36 = vsub.f32 %v192_v33, %v191_v34  ;;  %v196_v1 = vsub.f32 %v195_v0, %v191_v34 }
 0x17a   :  { %v194_v37 = vmax.f32 %v193_v36, 0.0  ;;  %v197_v38 = vmax.f32 %v196_v1, 0.0 }
 0x17c   :  { %v198_v39 = vadd.f32 %v197_v38, %v194_v37 }
 0x17e   :  { %v200_v40 = vsel %vm57_vm1, %v198_v39, 0.0 }
 0x17f   :  { %201 = vadd.xlane.f32.xlu1 %v200_v40 }
 0x20c   :  { %v202_v42 = vpop.xlane.xlu1 %201 }
 0x20d   :  { %v203_v43 = vadd.f32 %v202_v42, %v199_v41 }
 0x20f   :  { %205 = vst.msk [vmem:[%s344_s4] sm:$0xff] %vm21_vm3, %v203_v43 }

</bundles_post_ra>
